<compile_context>
chip_gen: v5e
topology: v5e:2x2
jax: 0.10.0
libtpu: 0.0.40
codegen_flags: <defaults>
</compile_context>

<pallas_src>
import jax
import jax.numpy as jnp
from jax.experimental import pallas as pl
from jax.experimental.pallas import tpu as pltpu

LN_EPS = 1e-5          # nn.LayerNorm default
LRELU_SLOPE = 0.01     # nn.LeakyReLU(0.01)
LANE = 128
SUBLANE = 8


def _round_up(x, m):
    return ((x + m - 1) // m) * m


# -----------------------------------------------------------------------------
# Fused kernel factory (static over layer count / real feature widths / dtype).
# -----------------------------------------------------------------------------
def _make_fused_kernel(num_hidden, real_dims, compute_dtype):
    """real_dims[i] = true (unpadded) feature count of hidden layer i."""

    def kernel(x_ref, *refs):
        o_ref = refs[-1]
        params = refs[:-1]

        x = x_ref[...]                                    # (TB, Din_pad) f32
        idx = 0
        for li in range(num_hidden):
            w_ref, b_ref, g_ref, be_ref = params[idx:idx + 4]
            idx += 4

            # MXU matmul: bf16 (or f32) inputs, f32 accumulate.
            y = jnp.dot(x.astype(compute_dtype), w_ref[...],
                        preferred_element_type=jnp.float32) + b_ref[...]

            inv_d = 1.0 / float(real_dims[li])
            # Padded lanes of y are exactly 0 (W cols, bias zero-padded), so
            # unmasked lane sums equal sums over the real features only.
            s1 = jnp.sum(y, axis=-1, keepdims=True)          # sum y
            s2 = jnp.sum(y * y, axis=-1, keepdims=True)      # sum y^2
            mean = s1 * inv_d
            var = s2 * inv_d - mean * mean
            inv = jax.lax.rsqrt(var + LN_EPS)                # EUP rsqrt

            scale = inv * g_ref[...]          # fuse gamma * inv (per-row scale)
            y_norm = (y - mean) * scale + be_ref[...]
            # gamma/beta are zero on padded lanes -> padded activations stay 0,
            # so the next layer's matmul sees exact zeros there.
            x = jnp.maximum(y_norm, LRELU_SLOPE * y_norm)    # LeakyReLU

        w_ref, b_ref = params[idx], params[idx + 1]
        o_ref[...] = jnp.dot(x.astype(compute_dtype), w_ref[...],
                             preferred_element_type=jnp.float32) + b_ref[...]

    return kernel


# -----------------------------------------------------------------------------
# Wrapper: pads everything lane/sublane dense, builds one fused pallas_call.
# -----------------------------------------------------------------------------
def dffnn_forward(x, params, *, use_bf16=True, batch_tile=256):
    hidden = params["hidden"]
    w_out, b_out = params["out"]
    num_hidden = len(hidden)

    B, Din = x.shape
    Dout = w_out.shape[1]
    compute_dtype = jnp.bfloat16 if use_bf16 else jnp.float32

    # Lane-dense feature padding; sublane-aligned batch tiling ("parallel" axis).
    Din_p = _round_up(Din, LANE)
    Dout_p = _round_up(Dout, LANE)
    TB = batch_tile if B >= batch_tile else _round_up(B, SUBLANE)
    B_p = _round_up(B, TB)

    x_p = jnp.zeros((B_p, Din_p), jnp.float32).at[:B, :Din].set(
        x.astype(jnp.float32))

    flat_inputs = [x_p]
    in_specs = [pl.BlockSpec((TB, Din_p), lambda i: (i, 0))]
    real_dims = []
    flops = 0
    bytes_accessed = x_p.size * 4

    d_prev_p = Din_p
    for (w, b, g, be) in hidden:
        d_in, d_out = w.shape
        d_out_p = _round_up(d_out, LANE)
        w_p = jnp.zeros((d_prev_p, d_out_p), jnp.float32).at[:d_in, :d_out].set(w)
        w_p = w_p.astype(compute_dtype)
        b_p = jnp.zeros((1, d_out_p), jnp.float32).at[0, :d_out].set(b)
        g_p = jnp.zeros((1, d_out_p), jnp.float32).at[0, :d_out].set(g)
        be_p = jnp.zeros((1, d_out_p), jnp.float32).at[0, :d_out].set(be)
        for arr in (w_p, b_p, g_p, be_p):
            flat_inputs.append(arr)
            # Full-array, grid-invariant block -> weight stays resident in VMEM.
            in_specs.append(pl.BlockSpec(arr.shape, lambda i: (0, 0)))
            bytes_accessed += arr.size * arr.dtype.itemsize
        real_dims.append(d_out)
        flops += 2 * B_p * d_prev_p * d_out_p
        d_prev_p = d_out_p

    w_out_p = jnp.zeros((d_prev_p, Dout_p), jnp.float32)
    w_out_p = w_out_p.at[:w_out.shape[0], :Dout].set(w_out).astype(compute_dtype)
    b_out_p = jnp.zeros((1, Dout_p), jnp.float32).at[0, :Dout].set(b_out)
    for arr in (w_out_p, b_out_p):
        flat_inputs.append(arr)
        in_specs.append(pl.BlockSpec(arr.shape, lambda i: (0, 0)))
        bytes_accessed += arr.size * arr.dtype.itemsize
    flops += 2 * B_p * d_prev_p * Dout_p
    bytes_accessed += B_p * Dout_p * 4

    kernel = _make_fused_kernel(num_hidden, tuple(real_dims), compute_dtype)

    out_p = pl.pallas_call(
        kernel,
        out_shape=jax.ShapeDtypeStruct((B_p, Dout_p), jnp.float32),
        grid=(B_p // TB,),
        in_specs=in_specs,
        out_specs=pl.BlockSpec((TB, Dout_p), lambda i: (i, 0)),
        compiler_params=pltpu.CompilerParams(
            dimension_semantics=("parallel",)),
        cost_estimate=pl.CostEstimate(
            flops=flops,
            transcendentals=B_p * num_hidden,      # one rsqrt per row per LN
            bytes_accessed=bytes_accessed),
    )(*flat_inputs)

    return out_p[:B, :Dout]


# -----------------------------------------------------------------------------
# Deterministic parameter init (shapes follow the PyTorch module __init__).
# Linear weights stored as (in_features, out_features) so the kernel computes
# x @ W + b (equivalent to PyTorch x @ W.T + b with W of shape (out, in)).
# -----------------------------------------------------------------------------
def init_params(key, input_size, hidden_sizes, output_size):
    hidden = []
    d_in = input_size
    for h in hidden_sizes:
        key, k_w, k_b = jax.random.split(key, 3)
        bound = 1.0 / jnp.sqrt(d_in)
        w = jax.random.uniform(k_w, (d_in, h), jnp.float32, -bound, bound)
        b = jax.random.uniform(k_b, (h,), jnp.float32, -bound, bound)
        gamma = jnp.ones((h,), jnp.float32)    # LayerNorm weight init
        beta = jnp.zeros((h,), jnp.float32)    # LayerNorm bias init
        hidden.append((w, b, gamma, beta))
        d_in = h
    key, k_w, k_b = jax.random.split(key, 3)
    bound = 1.0 / jnp.sqrt(d_in)
    w_out = jax.random.uniform(k_w, (d_in, output_size), jnp.float32, -bound, bound)
    b_out = jax.random.uniform(k_b, (output_size,), jnp.float32, -bound, bound)
    return {"hidden": hidden, "out": (w_out, b_out)}


# -----------------------------------------------------------------------------
# Pure-JAX reference (mirrors the kernel's matmul precision when use_bf16=True).
# -----------------------------------------------------------------------------
def dffnn_reference(x, params, *, use_bf16=True):
    cd = jnp.bfloat16 if use_bf16 else jnp.float32
    x = x.astype(jnp.float32)
    for (w, b, gamma, beta) in params["hidden"]:
        y = jnp.dot(x.astype(cd), w.astype(cd),
                    preferred_element_type=jnp.float32) + b
        mean = jnp.mean(y, axis=-1, keepdims=True)
        var = jnp.mean((y - mean) ** 2, axis=-1, keepdims=True)
        y = (y - mean) * jax.lax.rsqrt(var + LN_EPS) * gamma + beta
        x = jnp.where(y >= 0, y, LRELU_SLOPE * y)
    w_out, b_out = params["out"]
    return jnp.dot(x.astype(cd), w_out.astype(cd),
                   preferred_element_type=jnp.float32) + b_out


if __name__ == "__main__":
    key = jax.random.PRNGKey(0)

    batch = 8
    input_size = 32
    hidden_sizes = [64, 48]
    output_size = 16

    key, k_x, k_p = jax.random.split(key, 3)
    x = jax.random.normal(k_x, (batch, input_size), jnp.float32)
    params = init_params(k_p, input_size, hidden_sizes, output_size)

    # 1) Exact-semantics check: f32 matmul path vs pure-f32 reference.
    out_f32 = jax.block_until_ready(dffnn_forward(x, params, use_bf16=False))
    ref_f32 = dffnn_reference(x, params, use_bf16=False)
    assert out_f32.shape == (batch, output_size)
    assert jnp.allclose(out_f32, ref_f32, atol=1e-4, rtol=1e-4), \
        "f32 kernel mismatch vs reference"

    # 2) Fast path (bf16 MXU inputs, f32 accumulate / f32 epilogue) vs a
    #    precision-matched reference.
    out_bf16 = jax.block_until_ready(dffnn_forward(x, params, use_bf16=True))
    ref_bf16 = dffnn_reference(x, params, use_bf16=True)
    assert out_bf16.shape == (batch, output_size)
    assert jnp.allclose(out_bf16, ref_bf16, atol=1e-4, rtol=1e-4), \
        "bf16 kernel mismatch vs precision-matched reference"

    print("KERNEL_OK")
</pallas_src>

<mosaic_0001>
module attributes {stable_mosaic.version = 11 : i64} {
  func.func @kernel(%arg0: i32, %arg1: memref<8x128xf32, #tpu.memory_space<vmem>>, %arg2: memref<128x128xf32, #tpu.memory_space<vmem>>, %arg3: memref<1x128xf32, #tpu.memory_space<vmem>>, %arg4: memref<1x128xf32, #tpu.memory_space<vmem>>, %arg5: memref<1x128xf32, #tpu.memory_space<vmem>>, %arg6: memref<128x128xf32, #tpu.memory_space<vmem>>, %arg7: memref<1x128xf32, #tpu.memory_space<vmem>>, %arg8: memref<1x128xf32, #tpu.memory_space<vmem>>, %arg9: memref<1x128xf32, #tpu.memory_space<vmem>>, %arg10: memref<128x128xf32, #tpu.memory_space<vmem>>, %arg11: memref<1x128xf32, #tpu.memory_space<vmem>>, %arg12: memref<8x128xf32, #tpu.memory_space<vmem>>) attributes {dimension_semantics = [#tpu.dimension_semantics<parallel>], iteration_bounds = array<i64: 1>, scalar_prefetch = 0 : i64, scratch_operands = 0 : i64, tpu.core_type = #tpu.core_type<tc>, window_params = [{transform_indices = @transform_0, window_bounds = array<i64: 8, 128>}, {pipeline_mode = #tpu.pipeline_mode<synchronous>, transform_indices = @transform_1, window_bounds = array<i64: 128, 128>}, {pipeline_mode = #tpu.pipeline_mode<synchronous>, transform_indices = @transform_2, window_bounds = array<i64: 1, 128>}, {pipeline_mode = #tpu.pipeline_mode<synchronous>, transform_indices = @transform_3, window_bounds = array<i64: 1, 128>}, {pipeline_mode = #tpu.pipeline_mode<synchronous>, transform_indices = @transform_4, window_bounds = array<i64: 1, 128>}, {pipeline_mode = #tpu.pipeline_mode<synchronous>, transform_indices = @transform_5, window_bounds = array<i64: 128, 128>}, {pipeline_mode = #tpu.pipeline_mode<synchronous>, transform_indices = @transform_6, window_bounds = array<i64: 1, 128>}, {pipeline_mode = #tpu.pipeline_mode<synchronous>, transform_indices = @transform_7, window_bounds = array<i64: 1, 128>}, {pipeline_mode = #tpu.pipeline_mode<synchronous>, transform_indices = @transform_8, window_bounds = array<i64: 1, 128>}, {pipeline_mode = #tpu.pipeline_mode<synchronous>, transform_indices = @transform_9, window_bounds = array<i64: 128, 128>}, {pipeline_mode = #tpu.pipeline_mode<synchronous>, transform_indices = @transform_10, window_bounds = array<i64: 1, 128>}, {transform_indices = @transform_11, window_bounds = array<i64: 8, 128>}]} {
    %c0 = arith.constant 0 : index
    %c0_0 = arith.constant 0 : index
    %0 = vector.load %arg1[%c0, %c0_0] : memref<8x128xf32, #tpu.memory_space<vmem>>, vector<8x128xf32>
    %c0_1 = arith.constant 0 : index
    %c0_2 = arith.constant 0 : index
    %1 = vector.load %arg2[%c0_1, %c0_2] : memref<128x128xf32, #tpu.memory_space<vmem>>, vector<128x128xf32>
    %cst = arith.constant dense<0.000000e+00> : vector<8x128xf32>
    %2 = tpu.matmul %0, %1, %cst {dimension_numbers = #tpu.dot_dimension_numbers<[1], [0], [0], [1], [0, 0, 1, 1], [], []>} : vector<8x128xf32>, vector<128x128xf32>, vector<8x128xf32> -> vector<8x128xf32>
    %c0_3 = arith.constant 0 : index
    %c0_4 = arith.constant 0 : index
    %3 = vector.load %arg3[%c0_3, %c0_4] : memref<1x128xf32, #tpu.memory_space<vmem>>, vector<1x128xf32>
    %4 = vector.broadcast %3 : vector<1x128xf32> to vector<8x128xf32>
    %5 = arith.addf %2, %4 : vector<8x128xf32>
    %cst_5 = arith.constant dense<0.000000e+00> : vector<8xf32>
    %6 = vector.multi_reduction <add>, %5, %cst_5 [1] : vector<8x128xf32> to vector<8xf32>
    %7 = vector.shape_cast %6 : vector<8xf32> to vector<8x1xf32>
    %8 = arith.mulf %5, %5 : vector<8x128xf32>
    %cst_6 = arith.constant dense<0.000000e+00> : vector<8xf32>
    %9 = vector.multi_reduction <add>, %8, %cst_6 [1] : vector<8x128xf32> to vector<8xf32>
    %10 = vector.shape_cast %9 : vector<8xf32> to vector<8x1xf32>
    %cst_7 = arith.constant 1.562500e-02 : f32
    %11 = vector.broadcast %cst_7 : f32 to vector<8x1xf32>
    %12 = arith.mulf %7, %11 : vector<8x1xf32>
    %cst_8 = arith.constant 1.562500e-02 : f32
    %13 = vector.broadcast %cst_8 : f32 to vector<8x1xf32>
    %14 = arith.mulf %10, %13 : vector<8x1xf32>
    %15 = arith.mulf %12, %12 : vector<8x1xf32>
    %16 = arith.subf %14, %15 : vector<8x1xf32>
    %cst_9 = arith.constant 9.99999974E-6 : f32
    %17 = vector.broadcast %cst_9 : f32 to vector<8x1xf32>
    %18 = arith.addf %16, %17 : vector<8x1xf32>
    %19 = math.rsqrt %18 : vector<8x1xf32>
    %c0_10 = arith.constant 0 : index
    %c0_11 = arith.constant 0 : index
    %20 = vector.load %arg4[%c0_10, %c0_11] : memref<1x128xf32, #tpu.memory_space<vmem>>, vector<1x128xf32>
    %21 = vector.broadcast %19 : vector<8x1xf32> to vector<8x128xf32>
    %22 = vector.broadcast %20 : vector<1x128xf32> to vector<8x128xf32>
    %23 = arith.mulf %21, %22 : vector<8x128xf32>
    %24 = vector.broadcast %12 : vector<8x1xf32> to vector<8x128xf32>
    %25 = arith.subf %5, %24 : vector<8x128xf32>
    %26 = arith.mulf %25, %23 : vector<8x128xf32>
    %c0_12 = arith.constant 0 : index
    %c0_13 = arith.constant 0 : index
    %27 = vector.load %arg5[%c0_12, %c0_13] : memref<1x128xf32, #tpu.memory_space<vmem>>, vector<1x128xf32>
    %28 = vector.broadcast %27 : vector<1x128xf32> to vector<8x128xf32>
    %29 = arith.addf %26, %28 : vector<8x128xf32>
    %cst_14 = arith.constant 0.00999999977 : f32
    %30 = vector.broadcast %cst_14 : f32 to vector<8x128xf32>
    %31 = arith.mulf %30, %29 : vector<8x128xf32>
    %32 = arith.maximumf %29, %31 : vector<8x128xf32>
    %c0_15 = arith.constant 0 : index
    %c0_16 = arith.constant 0 : index
    %33 = vector.load %arg6[%c0_15, %c0_16] : memref<128x128xf32, #tpu.memory_space<vmem>>, vector<128x128xf32>
    %cst_17 = arith.constant dense<0.000000e+00> : vector<8x128xf32>
    %34 = tpu.matmul %32, %33, %cst_17 {dimension_numbers = #tpu.dot_dimension_numbers<[1], [0], [0], [1], [0, 0, 1, 1], [], []>} : vector<8x128xf32>, vector<128x128xf32>, vector<8x128xf32> -> vector<8x128xf32>
    %c0_18 = arith.constant 0 : index
    %c0_19 = arith.constant 0 : index
    %35 = vector.load %arg7[%c0_18, %c0_19] : memref<1x128xf32, #tpu.memory_space<vmem>>, vector<1x128xf32>
    %36 = vector.broadcast %35 : vector<1x128xf32> to vector<8x128xf32>
    %37 = arith.addf %34, %36 : vector<8x128xf32>
    %cst_20 = arith.constant dense<0.000000e+00> : vector<8xf32>
    %38 = vector.multi_reduction <add>, %37, %cst_20 [1] : vector<8x128xf32> to vector<8xf32>
    %39 = vector.shape_cast %38 : vector<8xf32> to vector<8x1xf32>
    %40 = arith.mulf %37, %37 : vector<8x128xf32>
    %cst_21 = arith.constant dense<0.000000e+00> : vector<8xf32>
    %41 = vector.multi_reduction <add>, %40, %cst_21 [1] : vector<8x128xf32> to vector<8xf32>
    %42 = vector.shape_cast %41 : vector<8xf32> to vector<8x1xf32>
    %cst_22 = arith.constant 0.020833334 : f32
    %43 = vector.broadcast %cst_22 : f32 to vector<8x1xf32>
    %44 = arith.mulf %39, %43 : vector<8x1xf32>
    %cst_23 = arith.constant 0.020833334 : f32
    %45 = vector.broadcast %cst_23 : f32 to vector<8x1xf32>
    %46 = arith.mulf %42, %45 : vector<8x1xf32>
    %47 = arith.mulf %44, %44 : vector<8x1xf32>
    %48 = arith.subf %46, %47 : vector<8x1xf32>
    %cst_24 = arith.constant 9.99999974E-6 : f32
    %49 = vector.broadcast %cst_24 : f32 to vector<8x1xf32>
    %50 = arith.addf %48, %49 : vector<8x1xf32>
    %51 = math.rsqrt %50 : vector<8x1xf32>
    %c0_25 = arith.constant 0 : index
    %c0_26 = arith.constant 0 : index
    %52 = vector.load %arg8[%c0_25, %c0_26] : memref<1x128xf32, #tpu.memory_space<vmem>>, vector<1x128xf32>
    %53 = vector.broadcast %51 : vector<8x1xf32> to vector<8x128xf32>
    %54 = vector.broadcast %52 : vector<1x128xf32> to vector<8x128xf32>
    %55 = arith.mulf %53, %54 : vector<8x128xf32>
    %56 = vector.broadcast %44 : vector<8x1xf32> to vector<8x128xf32>
    %57 = arith.subf %37, %56 : vector<8x128xf32>
    %58 = arith.mulf %57, %55 : vector<8x128xf32>
    %c0_27 = arith.constant 0 : index
    %c0_28 = arith.constant 0 : index
    %59 = vector.load %arg9[%c0_27, %c0_28] : memref<1x128xf32, #tpu.memory_space<vmem>>, vector<1x128xf32>
    %60 = vector.broadcast %59 : vector<1x128xf32> to vector<8x128xf32>
    %61 = arith.addf %58, %60 : vector<8x128xf32>
    %cst_29 = arith.constant 0.00999999977 : f32
    %62 = vector.broadcast %cst_29 : f32 to vector<8x128xf32>
    %63 = arith.mulf %62, %61 : vector<8x128xf32>
    %64 = arith.maximumf %61, %63 : vector<8x128xf32>
    %c0_30 = arith.constant 0 : index
    %c0_31 = arith.constant 0 : index
    %65 = vector.load %arg10[%c0_30, %c0_31] : memref<128x128xf32, #tpu.memory_space<vmem>>, vector<128x128xf32>
    %cst_32 = arith.constant dense<0.000000e+00> : vector<8x128xf32>
    %66 = tpu.matmul %64, %65, %cst_32 {dimension_numbers = #tpu.dot_dimension_numbers<[1], [0], [0], [1], [0, 0, 1, 1], [], []>} : vector<8x128xf32>, vector<128x128xf32>, vector<8x128xf32> -> vector<8x128xf32>
    %c0_33 = arith.constant 0 : index
    %c0_34 = arith.constant 0 : index
    %67 = vector.load %arg11[%c0_33, %c0_34] : memref<1x128xf32, #tpu.memory_space<vmem>>, vector<1x128xf32>
    %68 = vector.broadcast %67 : vector<1x128xf32> to vector<8x128xf32>
    %69 = arith.addf %66, %68 : vector<8x128xf32>
    %c0_35 = arith.constant 0 : index
    %c0_36 = arith.constant 0 : index
    %70 = vector.load %arg12[%c0_35, %c0_36] : memref<8x128xf32, #tpu.memory_space<vmem>>, vector<8x128xf32>
    tpu.vector_store %arg12[%c0_35, %c0_36], %69 {strides = array<i32>} : memref<8x128xf32, #tpu.memory_space<vmem>>, vector<8x128xf32>,
    return
  }
  func.func @transform_0(%arg0: i32) -> (i32, i32) {
    %c0_i32 = arith.constant 0 : i32
    %c0_i32_0 = arith.constant 0 : i32
    return %arg0, %c0_i32 : i32, i32
  }
  func.func @transform_1(%arg0: i32) -> (i32, i32) {
    %c0_i32 = arith.constant 0 : i32
    %c0_i32_0 = arith.constant 0 : i32
    %c0_i32_1 = arith.constant 0 : i32
    return %c0_i32, %c0_i32_0 : i32, i32
  }
  func.func @transform_2(%arg0: i32) -> (i32, i32) {
    %c0_i32 = arith.constant 0 : i32
    %c0_i32_0 = arith.constant 0 : i32
    %c0_i32_1 = arith.constant 0 : i32
    return %c0_i32, %c0_i32_0 : i32, i32
  }
  func.func @transform_3(%arg0: i32) -> (i32, i32) {
    %c0_i32 = arith.constant 0 : i32
    %c0_i32_0 = arith.constant 0 : i32
    %c0_i32_1 = arith.constant 0 : i32
    return %c0_i32, %c0_i32_0 : i32, i32
  }
  func.func @transform_4(%arg0: i32) -> (i32, i32) {
    %c0_i32 = arith.constant 0 : i32
    %c0_i32_0 = arith.constant 0 : i32
    %c0_i32_1 = arith.constant 0 : i32
    return %c0_i32, %c0_i32_0 : i32, i32
  }
  func.func @transform_5(%arg0: i32) -> (i32, i32) {
    %c0_i32 = arith.constant 0 : i32
    %c0_i32_0 = arith.constant 0 : i32
    %c0_i32_1 = arith.constant 0 : i32
    return %c0_i32, %c0_i32_0 : i32, i32
  }
  func.func @transform_6(%arg0: i32) -> (i32, i32) {
    %c0_i32 = arith.constant 0 : i32
    %c0_i32_0 = arith.constant 0 : i32
    %c0_i32_1 = arith.constant 0 : i32
    return %c0_i32, %c0_i32_0 : i32, i32
  }
  func.func @transform_7(%arg0: i32) -> (i32, i32) {
    %c0_i32 = arith.constant 0 : i32
    %c0_i32_0 = arith.constant 0 : i32
    %c0_i32_1 = arith.constant 0 : i32
    return %c0_i32, %c0_i32_0 : i32, i32
  }
  func.func @transform_8(%arg0: i32) -> (i32, i32) {
    %c0_i32 = arith.constant 0 : i32
    %c0_i32_0 = arith.constant 0 : i32
    %c0_i32_1 = arith.constant 0 : i32
    return %c0_i32, %c0_i32_0 : i32, i32
  }
  func.func @transform_9(%arg0: i32) -> (i32, i32) {
    %c0_i32 = arith.constant 0 : i32
    %c0_i32_0 = arith.constant 0 : i32
    %c0_i32_1 = arith.constant 0 : i32
    return %c0_i32, %c0_i32_0 : i32, i32
  }
  func.func @transform_10(%arg0: i32) -> (i32, i32) {
    %c0_i32 = arith.constant 0 : i32
    %c0_i32_0 = arith.constant 0 : i32
    %c0_i32_1 = arith.constant 0 : i32
    return %c0_i32, %c0_i32_0 : i32, i32
  }
  func.func @transform_11(%arg0: i32) -> (i32, i32) {
    %c0_i32 = arith.constant 0 : i32
    %c0_i32_0 = arith.constant 0 : i32
    return %arg0, %c0_i32 : i32, i32
  }
}

</mosaic_0001>

<bundles_post_ra>
// kernel: tpu_custom_call.1
= control target key start
LH: loop header
LB: loop body
LE: loop exit
PB: predicated region body
PF: predicated region fallthrough
CT: control target
= control target key end

     0   :  { %16 = vsyncpa [#allocation3], 0  ;;  %s558_s0 = inlined_call_operand.hbm [shape: f32[8,128], index: 0, kind: input, shape index: {}]   ;;  %s559_s1 = inlined_call_operand.hbm [shape: f32[128,128], index: 1, kind: input, shape index: {}]   ;;  %s560_s2 = inlined_call_operand.vmem [shape: f32[1,128], index: 2, kind: input, shape index: {}]   ;;  %s561_s3 = inlined_call_operand.vmem [shape: f32[1,128], index: 3, kind: input, shape index: {}]   ;;  %s562_s4 = inlined_call_operand.vmem [shape: f32[1,128], index: 4, kind: input, shape index: {}]   ;;  %s563_s5 = inlined_call_operand.hbm [shape: f32[128,128], index: 5, kind: input, shape index: {}]   ;;  %s564_s6 = inlined_call_operand.vmem [shape: f32[1,128], index: 6, kind: input, shape index: {}]   ;;  %s565_s7 = inlined_call_operand.vmem [shape: f32[1,128], index: 7, kind: input, shape index: {}]   ;;  %s566_s8 = inlined_call_operand.vmem [shape: f32[1,128], index: 8, kind: input, shape index: {}]   ;;  %s567_s9 = inlined_call_operand.hbm [shape: f32[128,128], index: 9, kind: input, shape index: {}]   ;;  %s568_s10 = inlined_call_operand.vmem [shape: f32[1,128], index: 10, kind: input, shape index: {}]   ;;  %s569_s11 = inlined_call_operand.hbm [shape: f32[8,128], index: 11, kind: output, shape index: {}]  }
   0x1   :  { %17 = vsyncpa [#allocation6], 0 }
   0x2   :  { %18 = vsyncpa [#allocation9], 0  ;;  %s35_s19 = sshll.u32 %s559_s1, 4  ;;  %s36_s19 = int_to_ptr.hbm [resolvable:$true] %s35_s19 }
   0x3   :  { %19 = vsyncpa [#allocation4], 0  ;;  %s455_s20 = smov [#allocation5]   ;;  %s25_s24 = sshll.u32 %s558_s0, 4  ;;  %s26_s24 = int_to_ptr.hbm [resolvable:$true] %s25_s24 }
   0x4   :  { %s37_s21 = sshll.u32 %s455_s20, 4  ;;  %s456_s25 = smov 128   ;;  %s38_s21 = int_to_ptr.vmem [resolvable:$true] %s37_s21 }
   0x5   :  { %s457_s26 = smov 8   ;;  %s458_s27 = smov [#allocation2]  }
   0x6   :  { %43 = dma.hbm_to_vmem [thread:$0]  %s36_s19, 2048, %s38_s21, [#allocation6], %s456_s25, %s456_s25, %s457_s26  }
   0x7   :  { %s27_s28 = sshll.u32 %s458_s27, 4  ;;  %s54_s12 = sshll.u32 %s563_s5, 4  ;;  %s28_s28 = int_to_ptr.vmem [resolvable:$true] %s27_s28  ;;  %s55_s12 = int_to_ptr.hbm [resolvable:$true] %s54_s12 }
   0x8   :  { %30 = dma.hbm_to_vmem [thread:$0]  %s26_s24, 128, %s28_s28, [#allocation3]  }
   0x9   :  { %s73_s14 = sshll.u32 %s567_s9, 4  ;;  %s459_s15 = smov [#allocation7]   ;;  %s74_s14 = int_to_ptr.hbm [resolvable:$true] %s73_s14 }
   0xa   :  { %s56_s16 = sshll.u32 %s459_s15, 4  ;;  %s460_s0 = smov [#allocation8]   ;;  %s57_s16 = int_to_ptr.vmem [resolvable:$true] %s56_s16 }
   0xb   :  { %62 = dma.hbm_to_vmem [thread:$0]  %s55_s12, 2048, %s57_s16, [#allocation6], %s456_s25, %s456_s25, %s457_s26  }
   0xc   :  { %s75_s17 = sshll.u32 %s460_s0, 4  ;;  %s76_s17 = int_to_ptr.vmem [resolvable:$true] %s75_s17 }
   0xd   :  { %81 = dma.hbm_to_vmem [thread:$0]  %s74_s14, 2048, %s76_s17, [#allocation9], %s456_s25, %s456_s25, %s457_s26  }
   0xe   :  { %447 = dma.done.wait [#allocation3], 128  }
   0xf   :  { %448 = vsyncadd [#allocation3], 4294967168 }
  0x10   :  { %449 = dma.done.wait [#allocation6], 4096  }
  0x11   :  { %450 = vsyncadd [#allocation6], 4294963200 }
  0x12   :  { %451 = dma.done.wait [#allocation9], 2048  }
  0x13   :  { %452 = vsyncadd [#allocation9], 4294965248  ;;  %v116_v0 = vld [vmem:[#allocation5 + $0x78] sm:$0xff]  ;;  %v115_v1 = vld [vmem:[#allocation5 + $0x70] sm:$0xff]  ;;  %s297_s29 = sshll.u32 %s569_s11, 4  ;;  %s298_s29 = int_to_ptr.hbm [resolvable:$true] %s297_s29 }
  0x14   :  { %121 = vmatpush.msra.mxu0 %v116_v0  ;;  %v114_v2 = vld [vmem:[#allocation5 + $0x68] sm:$0xff]  ;;  %v113_v3 = vld [vmem:[#allocation5 + $0x60] sm:$0xff]  ;;  %v112_v4 = vld [vmem:[#allocation5 + $0x58] sm:$0xff] }
  0x15   :  { %v111_v5 = vld [vmem:[#allocation5 + $0x50] sm:$0xff]  ;;  %v110_v6 = vld [vmem:[#allocation5 + $0x48] sm:$0xff]  ;;  %v109_v7 = vld [vmem:[#allocation5 + $0x40] sm:$0xff] }
  0x16   :  { %122 = vmatpush.msra.mxu0 %v115_v1  ;;  %v108_v8 = vld [vmem:[#allocation5 + $0x38] sm:$0xff]  ;;  %v107_v9 = vld [vmem:[#allocation5 + $0x30] sm:$0xff]  ;;  %v106_v10 = vld [vmem:[#allocation5 + $0x28] sm:$0xff] }
  0x17   :  { %v105_v11 = vld [vmem:[#allocation5 + $0x20] sm:$0xff]  ;;  %v104_v12 = vld [vmem:[#allocation5 + $0x18] sm:$0xff]  ;;  %v103_v13 = vld [vmem:[#allocation5 + $0x10] sm:$0xff] }
  0x18   :  { %123 = vmatpush.msra.mxu0 %v114_v2  ;;  %v102_v14 = vld [vmem:[#allocation5 + $0x8] sm:$0xff]  ;;  %v101_v15 = vld [vmem:[#allocation5] sm:$0xff]  ;;  %v100_v16 = vld [vmem:[#allocation2] sm:$0xff] }
  0x19   :  { %v316_v17 = vld [vmem:[%s560_s2] ss:$0 sm:$0xff]  ;;  %v189_v22 = vld [vmem:[#allocation7 + $0x70] sm:$0xff]  ;;  %v188_v23 = vld [vmem:[#allocation7 + $0x68] sm:$0xff] }
  0x1a   :  { %124 = vmatpush.msra.mxu0 %v113_v3  ;;  %v190_v21 = vld [vmem:[#allocation7 + $0x78] sm:$0xff]  ;;  %v187_v24 = vld [vmem:[#allocation7 + $0x60] sm:$0xff]  ;;  %v185_v26 = vld [vmem:[#allocation7 + $0x50] sm:$0xff] }
  0x1b   :  { %195 = vmatpush.msra.mxu1 %v190_v21  ;;  %v186_v25 = vld [vmem:[#allocation7 + $0x58] sm:$0xff]  ;;  %v184_v27 = vld [vmem:[#allocation7 + $0x48] sm:$0xff]  ;;  %v183_v28 = vld [vmem:[#allocation7 + $0x40] sm:$0xff] }
  0x1c   :  { %125 = vmatpush.msra.mxu0 %v112_v4  ;;  %v182_v29 = vld [vmem:[#allocation7 + $0x38] sm:$0xff]  ;;  %v181_v30 = vld [vmem:[#allocation7 + $0x30] sm:$0xff]  ;;  %v180_v31 = vld [vmem:[#allocation7 + $0x28] sm:$0xff] }
  0x1d   :  { %196 = vmatpush.msra.mxu1 %v189_v22  ;;  %v179_v32 = vld [vmem:[#allocation7 + $0x20] sm:$0xff]  ;;  %v178_v34 = vld [vmem:[#allocation7 + $0x18] sm:$0xff]  ;;  %v177_v35 = vld [vmem:[#allocation7 + $0x10] sm:$0xff] }
  0x1e   :  { %126 = vmatpush.msra.mxu0 %v111_v5  ;;  %v176_v37 = vld [vmem:[#allocation7 + $0x8] sm:$0xff]  ;;  %v175_v38 = vld [vmem:[#allocation7] sm:$0xff]  ;;  %v317_v49 = vld [vmem:[%s561_s3] ss:$0 sm:$0xff] }
  0x1f   :  { %197 = vmatpush.msra.mxu1 %v188_v23  ;;  %v318_v54 = vld [vmem:[%s562_s4] ss:$0 sm:$0xff]  ;;  %v263_v0 = vld [vmem:[#allocation8 + $0x70] sm:$0xff]  ;;  %v262_v1 = vld [vmem:[#allocation8 + $0x68] sm:$0xff] }
  0x20   :  { %127 = vmatpush.msra.mxu0 %v110_v6  ;;  %v319_v59 = vld [vmem:[%s564_s6] ss:$0 sm:$0xff]  ;;  %v261_v2 = vld [vmem:[#allocation8 + $0x60] sm:$0xff]  ;;  %v259_v4 = vld [vmem:[#allocation8 + $0x50] sm:$0xff] }
  0x21   :  { %198 = vmatpush.msra.mxu1 %v187_v24  ;;  %v264_v63 = vld [vmem:[#allocation8 + $0x78] sm:$0xff]  ;;  %v258_v5 = vld [vmem:[#allocation8 + $0x48] sm:$0xff]  ;;  %v257_v6 = vld [vmem:[#allocation8 + $0x40] sm:$0xff] }
  0x22   :  { %128 = vmatpush.msra.mxu0 %v109_v7  ;;  %269 = vmatpush.msra.mxu2 %v264_v63  ;;  %v260_v3 = vld [vmem:[#allocation8 + $0x58] sm:$0xff] }
  0x23   :  { %199 = vmatpush.msra.mxu1 %v186_v25  ;;  %v256_v7 = vld [vmem:[#allocation8 + $0x38] sm:$0xff] }
  0x24   :  { %129 = vmatpush.msra.mxu0 %v108_v8  ;;  %270 = vmatpush.msra.mxu2 %v263_v0  ;;  %v255_v8 = vld [vmem:[#allocation8 + $0x30] sm:$0xff] }
  0x25   :  { %200 = vmatpush.msra.mxu1 %v185_v26 }
  0x26   :  { %130 = vmatpush.msra.mxu0 %v107_v9  ;;  %271 = vmatpush.msra.mxu2 %v262_v1  ;;  %v254_v9 = vld [vmem:[#allocation8 + $0x28] sm:$0xff] }
  0x27   :  { %201 = vmatpush.msra.mxu1 %v184_v27  ;;  %v320_v27 = vld [vmem:[%s565_s7] ss:$0 sm:$0xff]  ;;  %s461_s7 = smov [#allocation10]  }
  0x28   :  { %131 = vmatpush.msra.mxu0 %v106_v10  ;;  %272 = vmatpush.msra.mxu2 %v261_v2  ;;  %v253_v10 = vld [vmem:[#allocation8 + $0x20] sm:$0xff]  ;;  %s295_s26 = sshll.u32 %s461_s7, 4  ;;  %s296_s26 = int_to_ptr.vmem [resolvable:$true] %s295_s26 }
  0x29   :  { %202 = vmatpush.msra.mxu1 %v183_v28 }
  0x2a   :  { %132 = vmatpush.msra.mxu0 %v105_v11  ;;  %273 = vmatpush.msra.mxu2 %v260_v3 }
  0x2b   :  { %203 = vmatpush.msra.mxu1 %v182_v29 }
  0x2c   :  { %133 = vmatpush.msra.mxu0 %v104_v12  ;;  %274 = vmatpush.msra.mxu2 %v259_v4  ;;  %v252_v12 = vld [vmem:[#allocation8 + $0x18] sm:$0xff] }
  0x2d   :  { %204 = vmatpush.msra.mxu1 %v181_v30 }
  0x2e   :  { %134 = vmatpush.msra.mxu0 %v103_v13  ;;  %275 = vmatpush.msra.mxu2 %v258_v5  ;;  %v251_v13 = vld [vmem:[#allocation8 + $0x10] sm:$0xff] }
  0x2f   :  { %205 = vmatpush.msra.mxu1 %v180_v31 }
  0x30   :  { %135 = vmatpush.msra.mxu0 %v102_v14  ;;  %276 = vmatpush.msra.mxu2 %v257_v6 }
  0x31   :  { %206 = vmatpush.msra.mxu1 %v179_v32  ;;  %v321_v32 = vld [vmem:[%s566_s8] ss:$0 sm:$0xff] }
  0x32   :  { %136 = vmatpush.msra.mxu0 %v101_v15  ;;  %277 = vmatpush.msra.mxu2 %v256_v7  ;;  %v250_v15 = vld [vmem:[#allocation8 + $0x8] sm:$0xff] }
  0x33   :  { %137 = vmatmul.f32.vlgmr.msra.gmra.mxu0 %v100_v16  ;;  %207 = vmatpush.msra.mxu1 %v178_v34  ;;  %v249_v16 = vld [vmem:[#allocation8] sm:$0xff] }
  0x34   :  { %278 = vmatpush.msra.mxu2 %v255_v8 }
  0x35   :  { %208 = vmatpush.msra.mxu1 %v177_v35 }
  0x36   :  { %279 = vmatpush.msra.mxu2 %v254_v9 }
  0x37   :  { %209 = vmatpush.msra.mxu1 %v176_v37  ;;  %v322_v37 = vld [vmem:[%s568_s10] ss:$0 sm:$0xff] }
  0x38   :  { %280 = vmatpush.msra.mxu2 %v253_v10 }
  0x39   :  { %210 = vmatpush.msra.mxu1 %v175_v38 }
  0x3a   :  { %281 = vmatpush.msra.mxu2 %v252_v12 }
  0x3c   :  { %282 = vmatpush.msra.mxu2 %v251_v13 }
  0x3e   :  { %283 = vmatpush.msra.mxu2 %v250_v15 }
  0x40   :  { %284 = vmatpush.msra.mxu2 %v249_v16 }
  0xb0   :  { %v138_v18 = vpop.f32.mrf.mxu0 }
  0xb1   :  { %v139_v19 = vadd.f32 %v316_v17, %v138_v18 }
  0xb3   :  { %141 = vadd.xlane.f32.xlu0 %v139_v19  ;;  %v143_v20 = vmul.f32 %v139_v19, %v139_v19 }
  0xbb   :  { %144 = vadd.xlane.f32.xlu0 %v143_v20 }
 0x126   :  { %v142_v33 = vpop.xlane.xlu0 %141 }
 0x127   :  { %v146_v36 = vmul.f32 0.015625, %v142_v33 }
 0x129   :  { %v148_v40 = vmul.f32 %v146_v36, %v146_v36  ;;  %v166_v52 = vsub.f32 %v139_v19, %v146_v36 }
 0x12e   :  { %v145_v39 = vpop.xlane.xlu0 %144 }
 0x12f   :  { %v147_v41 = vmul.f32 0.015625, %v145_v39 }
 0x131   :  { %v149_v42 = vsub.f32 %v147_v41, %v148_v40 }
 0x133   :  { %v150_v43 = vadd.f32 1e-05, %v149_v42 }
 0x135   :  { %323 = vrsqrt.f32 %v150_v43  ;;  %vm157_vm1 = vweird.f32 %v150_v43 }
 0x13b   :  { %v324_v44 = vpop.eup %323 }
 0x13c   :  { %v152_v45 = vmul.f32 %v324_v44, %v150_v43  ;;  %vm158_vm0 = vweird.f32 %v324_v44 }
 0x13d   :  { %vm159_vm2 = vmor %vm157_vm1, %vm158_vm0 }
 0x13e   :  { %v153_v46 = vmul.f32 %v324_v44, %v152_v45 }
 0x140   :  { %v154_v47 = vmul.f32 0.5, %v153_v46 }
 0x142   :  { %v155_v48 = vsub.f32 1.5, %v154_v47 }
 0x144   :  { %v156_v50 = vmul.f32 %v324_v44, %v155_v48 }
 0x146   :  { %v160_v51 = vsel %vm159_vm2, %v324_v44, %v156_v50 }
 0x147   :  { %v165_v53 = vmul.f32 %v317_v49, %v160_v51 }
 0x149   :  { %v167_v55 = vmul.f32 %v166_v52, %v165_v53 }
 0x14b   :  { %v172_v56 = vadd.f32 %v318_v54, %v167_v55 }
 0x14d   :  { %v173_v57 = vmul.f32 0.01, %v172_v56 }
 0x14f   :  { %v174_v58 = vmax.f32 %v172_v56, %v173_v57 }
 0x151   :  { %211 = vmatmul.f32.vlgmr.msra.gmra.mxu1 %v174_v58 }
 0x1ce   :  { %v212_v60 = vpop.f32.mrf.mxu1 }
 0x1cf   :  { %v213_v61 = vadd.f32 %v319_v59, %v212_v60 }
 0x1d1   :  { %215 = vadd.xlane.f32.xlu1 %v213_v61  ;;  %v217_v62 = vmul.f32 %v213_v61, %v213_v61 }
 0x1d9   :  { %218 = vadd.xlane.f32.xlu1 %v217_v62 }
 0x244   :  { %v216_v11 = vpop.xlane.xlu1 %215 }
 0x245   :  { %v220_v14 = vmul.f32 0.020833334, %v216_v11 }
 0x247   :  { %v222_v18 = vmul.f32 %v220_v14, %v220_v14  ;;  %v240_v30 = vsub.f32 %v213_v61, %v220_v14 }
 0x24c   :  { %v219_v17 = vpop.xlane.xlu1 %218 }
 0x24d   :  { %v221_v19 = vmul.f32 0.020833334, %v219_v17 }
 0x24f   :  { %v223_v20 = vsub.f32 %v221_v19, %v222_v18 }
 0x251   :  { %v224_v21 = vadd.f32 1e-05, %v223_v20 }
 0x253   :  { %325 = vrsqrt.f32 %v224_v21  ;;  %vm231_vm4 = vweird.f32 %v224_v21 }
 0x259   :  { %v326_v22 = vpop.eup %325 }
 0x25a   :  { %v226_v23 = vmul.f32 %v326_v22, %v224_v21  ;;  %vm232_vm3 = vweird.f32 %v326_v22 }
 0x25b   :  { %vm233_vm5 = vmor %vm231_vm4, %vm232_vm3 }
 0x25c   :  { %v227_v24 = vmul.f32 %v326_v22, %v226_v23 }
 0x25e   :  { %v228_v25 = vmul.f32 0.5, %v227_v24 }
 0x260   :  { %v229_v26 = vsub.f32 1.5, %v228_v25 }
 0x262   :  { %v230_v28 = vmul.f32 %v326_v22, %v229_v26 }
 0x264   :  { %v234_v29 = vsel %vm233_vm5, %v326_v22, %v230_v28 }
 0x265   :  { %v239_v31 = vmul.f32 %v320_v27, %v234_v29 }
 0x267   :  { %v241_v33 = vmul.f32 %v240_v30, %v239_v31 }
 0x269   :  { %v246_v34 = vadd.f32 %v321_v32, %v241_v33 }
 0x26b   :  { %v247_v35 = vmul.f32 0.01, %v246_v34 }
 0x26d   :  { %v248_v36 = vmax.f32 %v246_v34, %v247_v35 }
 0x26f   :  { %285 = vmatmul.f32.vlgmr.msra.gmra.mxu2 %v248_v36 }
 0x2f2   :  { %v286_v38 = vpop.f32.mrf.mxu2 }
 0x2f3   :  { %v287_v39 = vadd.f32 %v322_v37, %v286_v38 }
 0x2f5   :  { %289 = vst [vmem:[#allocation10] sm:$0xff] %v287_v39 }
 0x2f6   :  { %300 = dma.vmem_to_hbm [thread:$0]  %s296_s26, 128, %s298_s29, [#allocation4]  }
 0x2f7   :  { %453 = dma.done.wait [#allocation4], 128  }
 0x2f8   :  { %454 = vsyncadd [#allocation4], 4294967168 }
 0x2f9   :  { %305 = vsyncpa [#allocation3], 1 }
 0x2fa   :  { %306 = vsyncpa [#allocation6], 1 }
 0x2fb   :  { %307 = vsyncpa [#allocation9], 1 }
 0x2fc   :  { %308 = vsyncpa [#allocation4], 1 }

</bundles_post_ra>
